<compile_context>
chip_gen: v7x
topology: tpu7x:2x2x1
jax: 0.10.0
libtpu: 0.0.40
codegen_flags: <defaults>
</compile_context>

<pallas_src>
import jax
import jax.numpy as jnp
from jax.experimental import pallas as pl
from jax.experimental.pallas import tpu as pltpu

CHAR_SIZE = 20
EMBEDDING_SIZE = 768
K_TOTAL = CHAR_SIZE * EMBEDDING_SIZE   # 15360 = 120 * 128


def _net_kernel(x_ref, w1_ref, b1_ref, w2_ref, b2_ref, o_ref):
    # fc1: (tb, K) x (8, K) contracted over K (both operands lane-dense) -> (tb, 8)
    h = jax.lax.dot_general(
        x_ref[...], w1_ref[...],
        dimension_numbers=(((1,), (1,)), ((), ())),
        preferred_element_type=jnp.float32,
    )
    # bias + relu (dropout is identity in eval mode)
    # TODO(synk): training-mode dropout would use pltpu.prng_seed + stateful_bernoulli.
    h = jnp.maximum(h + b1_ref[...], 0.0)

    # fc2 on the VPU: y[b, n] = sum_j h[b, j] * W2[n, j]  (W2 stored (2, 8), lane-dense rows)
    w2 = w2_ref[...]                                                   # (2, 8)
    y0 = jnp.sum(h * w2[0:1, :], axis=-1, keepdims=True)               # (tb, 1)
    y1 = jnp.sum(h * w2[1:2, :], axis=-1, keepdims=True)               # (tb, 1)
    y = jnp.concatenate([y0, y1], axis=-1) + b2_ref[...]               # (tb, 2)
    o_ref[...] = jnp.maximum(y, 0.0).astype(o_ref.dtype)


def net_forward(x, w1, b1, w2, b2, *, tb=256, feed_dtype=jnp.float32):
    """Net forward.

    x : (B, char_size, embedding_size) float32
    w1: (8, K_TOTAL)   (torch nn.Linear layout: (out, in))
    b1: (8,)
    w2: (2, 8)
    b2: (2,)
    Returns (B, 2) float32.
    """
    B = x.shape[0]
    assert x.shape[1:] == (CHAR_SIZE, EMBEDDING_SIZE), x.shape
    assert w1.shape == (8, K_TOTAL) and w2.shape == (2, 8)

    x_flat = x.reshape(B, K_TOTAL).astype(feed_dtype)   # same order as torch .view
    w1_f = w1.astype(feed_dtype)
    b1_2d = b1.reshape(1, 8).astype(jnp.float32)
    w2_2d = w2.reshape(2, 8).astype(jnp.float32)
    b2_2d = b2.reshape(1, 2).astype(jnp.float32)

    # Batch tiling: single step for small B (block == full array), otherwise grid
    # over B with a sublane-friendly tile and megacore-parallel semantics.
    if B <= tb:
        tb_eff, bp = B, B
    else:
        assert tb % 8 == 0, "batch tile must be a multiple of 8 (sublane)"
        tb_eff = tb
        bp = ((B + tb - 1) // tb) * tb
        if bp != B:
            x_flat = jnp.pad(x_flat, ((0, bp - B), (0, 0)))
    n_b = bp // tb_eff

    itemsize = jnp.dtype(feed_dtype).itemsize
    cost = pl.CostEstimate(
        flops=2 * bp * K_TOTAL * 8 + 2 * bp * 8 * 2,
        transcendentals=0,
        bytes_accessed=(bp * K_TOTAL * itemsize      # x
                        + 8 * K_TOTAL * itemsize     # W1
                        + bp * 2 * 4),               # out
    )

    out = pl.pallas_call(
        _net_kernel,
        out_shape=jax.ShapeDtypeStruct((bp, 2), jnp.float32),
        grid_spec=pltpu.PrefetchScalarGridSpec(
            num_scalar_prefetch=0,
            grid=(n_b,),
            in_specs=[
                pl.BlockSpec((tb_eff, K_TOTAL), lambda i: (i, 0)),  # x batch tile
                pl.BlockSpec((8, K_TOTAL), lambda i: (0, 0)),       # W1 (resident)
                pl.BlockSpec((1, 8), lambda i: (0, 0)),             # b1 (resident)
                pl.BlockSpec((2, 8), lambda i: (0, 0)),             # W2 (resident)
                pl.BlockSpec((1, 2), lambda i: (0, 0)),             # b2 (resident)
            ],
            out_specs=pl.BlockSpec((tb_eff, 2), lambda i: (i, 0)),
        ),
        compiler_params=pltpu.CompilerParams(
            dimension_semantics=("parallel",),          # batch axis -> megacore shardable
            vmem_limit_bytes=48 * 1024 * 1024,          # fits v7x 64 MiB, > v5e/v6e defaults
        ),
        cost_estimate=cost,
    )(x_flat, w1_f, b1_2d, w2_2d, b2_2d)

    return out[:B]


def reference_forward(x, w1, b1, w2, b2):
    B = x.shape[0]
    x_flat = x.reshape(B, K_TOTAL)
    h = jax.nn.relu(x_flat @ w1.T + b1)
    return jax.nn.relu(h @ w2.T + b2)


if __name__ == "__main__":
    key = jax.random.PRNGKey(0)
    k_x, k_w1, k_b1, k_w2, k_b2 = jax.random.split(key, 5)

    # Deterministic parameter init; weights stored in torch nn.Linear (out, in) layout.
    lim1 = 1.0 / (K_TOTAL ** 0.5)
    w1 = jax.random.uniform(k_w1, (8, K_TOTAL), minval=-lim1, maxval=lim1,
                            dtype=jnp.float32)
    b1 = jax.random.uniform(k_b1, (8,), minval=-lim1, maxval=lim1,
                            dtype=jnp.float32)
    lim2 = 1.0 / (8 ** 0.5)
    w2 = jax.random.uniform(k_w2, (2, 8), minval=-lim2, maxval=lim2,
                            dtype=jnp.float32)
    b2 = jax.random.uniform(k_b2, (2,), minval=-lim2, maxval=lim2,
                            dtype=jnp.float32)

    # Test 1: small batch -> single grid step (block == full array).
    B1 = 2
    x1 = jax.random.normal(k_x, (B1, CHAR_SIZE, EMBEDDING_SIZE), dtype=jnp.float32)
    out1 = jax.block_until_ready(net_forward(x1, w1, b1, w2, b2))
    ref1 = reference_forward(x1, w1, b1, w2, b2)
    assert out1.shape == (B1, 2)
    assert jnp.allclose(out1, ref1, atol=2e-4, rtol=2e-4), (out1, ref1)

    # Test 2: gridded + padded batch path (tb=8 -> grid of 3, last tile padded).
    B2 = 20
    x2 = jax.random.normal(jax.random.PRNGKey(1),
                           (B2, CHAR_SIZE, EMBEDDING_SIZE), dtype=jnp.float32)
    out2 = jax.block_until_ready(net_forward(x2, w1, b1, w2, b2, tb=8))
    ref2 = reference_forward(x2, w1, b1, w2, b2)
    assert out2.shape == (B2, 2)
    assert jnp.allclose(out2, ref2, atol=2e-4, rtol=2e-4), (out2, ref2)

    print("KERNEL_OK")
</pallas_src>

<mosaic_0001>
module attributes {stable_mosaic.version = 11 : i64} {
  func.func @_net_kernel(%arg0: i32, %arg1: memref<2x15360xf32, #tpu.memory_space<vmem>>, %arg2: memref<8x15360xf32, #tpu.memory_space<vmem>>, %arg3: memref<1x8xf32, #tpu.memory_space<vmem>>, %arg4: memref<2x8xf32, #tpu.memory_space<vmem>>, %arg5: memref<1x2xf32, #tpu.memory_space<vmem>>, %arg6: memref<2x2xf32, #tpu.memory_space<vmem>>) attributes {dimension_semantics = [#tpu.dimension_semantics<parallel>], iteration_bounds = array<i64: 1>, scalar_prefetch = 0 : i64, scratch_operands = 0 : i64, tpu.core_type = #tpu.core_type<tc>, window_params = [{transform_indices = @transform_0, window_bounds = array<i64: 2, 15360>}, {pipeline_mode = #tpu.pipeline_mode<synchronous>, transform_indices = @transform_1, window_bounds = array<i64: 8, 15360>}, {pipeline_mode = #tpu.pipeline_mode<synchronous>, transform_indices = @transform_2, window_bounds = array<i64: 1, 8>}, {pipeline_mode = #tpu.pipeline_mode<synchronous>, transform_indices = @transform_3, window_bounds = array<i64: 2, 8>}, {pipeline_mode = #tpu.pipeline_mode<synchronous>, transform_indices = @transform_4, window_bounds = array<i64: 1, 2>}, {transform_indices = @transform_5, window_bounds = array<i64: 2, 2>}]} {
    %c0 = arith.constant 0 : index
    %c0_0 = arith.constant 0 : index
    %0 = vector.load %arg1[%c0, %c0_0] : memref<2x15360xf32, #tpu.memory_space<vmem>>, vector<2x15360xf32>
    %c0_1 = arith.constant 0 : index
    %c0_2 = arith.constant 0 : index
    %1 = vector.load %arg2[%c0_1, %c0_2] : memref<8x15360xf32, #tpu.memory_space<vmem>>, vector<8x15360xf32>
    %cst = arith.constant dense<0.000000e+00> : vector<2x8xf32>
    %2 = tpu.matmul %0, %1, %cst {dimension_numbers = #tpu.dot_dimension_numbers<[1], [1], [0], [0], [0, 0, 1, 0], [], []>} : vector<2x15360xf32>, vector<8x15360xf32>, vector<2x8xf32> -> vector<2x8xf32>
    %c0_3 = arith.constant 0 : index
    %c0_4 = arith.constant 0 : index
    %3 = vector.load %arg3[%c0_3, %c0_4] : memref<1x8xf32, #tpu.memory_space<vmem>>, vector<1x8xf32>
    %4 = vector.broadcast %3 : vector<1x8xf32> to vector<2x8xf32>
    %5 = arith.addf %2, %4 : vector<2x8xf32>
    %cst_5 = arith.constant 0.000000e+00 : f32
    %6 = vector.broadcast %cst_5 : f32 to vector<2x8xf32>
    %7 = arith.maximumf %5, %6 : vector<2x8xf32>
    %c0_6 = arith.constant 0 : index
    %c0_7 = arith.constant 0 : index
    %8 = vector.load %arg4[%c0_6, %c0_7] : memref<2x8xf32, #tpu.memory_space<vmem>>, vector<2x8xf32>
    %9 = vector.extract_strided_slice %8 {offsets = [0, 0], sizes = [1, 8], strides = [1, 1]} : vector<2x8xf32> to vector<1x8xf32>
    %10 = vector.broadcast %9 : vector<1x8xf32> to vector<2x8xf32>
    %11 = arith.mulf %7, %10 : vector<2x8xf32>
    %cst_8 = arith.constant dense<0.000000e+00> : vector<2xf32>
    %12 = vector.multi_reduction <add>, %11, %cst_8 [1] : vector<2x8xf32> to vector<2xf32>
    %13 = vector.shape_cast %12 : vector<2xf32> to vector<2x1xf32>
    %14 = vector.extract_strided_slice %8 {offsets = [1, 0], sizes = [1, 8], strides = [1, 1]} : vector<2x8xf32> to vector<1x8xf32>
    %15 = vector.broadcast %14 : vector<1x8xf32> to vector<2x8xf32>
    %16 = arith.mulf %7, %15 : vector<2x8xf32>
    %cst_9 = arith.constant dense<0.000000e+00> : vector<2xf32>
    %17 = vector.multi_reduction <add>, %16, %cst_9 [1] : vector<2x8xf32> to vector<2xf32>
    %18 = vector.shape_cast %17 : vector<2xf32> to vector<2x1xf32>
    %19 = tpu.concatenate %13, %18 in 1 : vector<2x1xf32>, vector<2x1xf32> -> vector<2x2xf32>
    %c0_10 = arith.constant 0 : index
    %c0_11 = arith.constant 0 : index
    %20 = vector.load %arg5[%c0_10, %c0_11] : memref<1x2xf32, #tpu.memory_space<vmem>>, vector<1x2xf32>
    %21 = vector.broadcast %20 : vector<1x2xf32> to vector<2x2xf32>
    %22 = arith.addf %19, %21 : vector<2x2xf32>
    %cst_12 = arith.constant 0.000000e+00 : f32
    %23 = vector.broadcast %cst_12 : f32 to vector<2x2xf32>
    %24 = arith.maximumf %22, %23 : vector<2x2xf32>
    %c0_13 = arith.constant 0 : index
    %c0_14 = arith.constant 0 : index
    %25 = vector.load %arg6[%c0_13, %c0_14] : memref<2x2xf32, #tpu.memory_space<vmem>>, vector<2x2xf32>
    tpu.vector_store %arg6[%c0_13, %c0_14], %24 {strides = array<i32>} : memref<2x2xf32, #tpu.memory_space<vmem>>, vector<2x2xf32>,
    return
  }
  func.func @transform_0(%arg0: i32) -> (i32, i32) {
    %c0_i32 = arith.constant 0 : i32
    %c0_i32_0 = arith.constant 0 : i32
    return %arg0, %c0_i32 : i32, i32
  }
  func.func @transform_1(%arg0: i32) -> (i32, i32) {
    %c0_i32 = arith.constant 0 : i32
    %c0_i32_0 = arith.constant 0 : i32
    %c0_i32_1 = arith.constant 0 : i32
    return %c0_i32, %c0_i32_0 : i32, i32
  }
  func.func @transform_2(%arg0: i32) -> (i32, i32) {
    %c0_i32 = arith.constant 0 : i32
    %c0_i32_0 = arith.constant 0 : i32
    %c0_i32_1 = arith.constant 0 : i32
    return %c0_i32, %c0_i32_0 : i32, i32
  }
  func.func @transform_3(%arg0: i32) -> (i32, i32) {
    %c0_i32 = arith.constant 0 : i32
    %c0_i32_0 = arith.constant 0 : i32
    %c0_i32_1 = arith.constant 0 : i32
    return %c0_i32, %c0_i32_0 : i32, i32
  }
  func.func @transform_4(%arg0: i32) -> (i32, i32) {
    %c0_i32 = arith.constant 0 : i32
    %c0_i32_0 = arith.constant 0 : i32
    %c0_i32_1 = arith.constant 0 : i32
    return %c0_i32, %c0_i32_0 : i32, i32
  }
  func.func @transform_5(%arg0: i32) -> (i32, i32) {
    %c0_i32 = arith.constant 0 : i32
    %c0_i32_0 = arith.constant 0 : i32
    return %arg0, %c0_i32 : i32, i32
  }
}

</mosaic_0001>

<bundles_post_ra>
// kernel: tpu_custom_call.1
= control target key start
LH: loop header
LB: loop body
LE: loop exit
PB: predicated region body
PF: predicated region fallthrough
CT: control target
= control target key end

     0   :  { %10 = vsyncpa [#allocation3], 0  ;;  %s5482_s0 = inlined_call_operand.hbm [shape: f32[2,15360], index: 0, kind: input, shape index: {}]   ;;  %s5483_s1 = inlined_call_operand.hbm [shape: f32[8,15360], index: 1, kind: input, shape index: {}]   ;;  %s5484_s2 = inlined_call_operand.vmem [shape: f32[1,8], index: 2, kind: input, shape index: {}]   ;;  %s5485_s3 = inlined_call_operand.vmem [shape: f32[2,8], index: 3, kind: input, shape index: {}]   ;;  %s5486_s4 = inlined_call_operand.vmem [shape: f32[1,2], index: 4, kind: input, shape index: {}]   ;;  %s5487_s5 = inlined_call_operand.hbm [shape: f32[2,2], index: 5, kind: output, shape index: {}]  }
   0x1   :  { %11 = vsyncpa [#allocation6], 0 }
   0x2   :  { %12 = vsyncpa [#allocation4], 0  ;;  %s5336_s18 = smov [#allocation2]   ;;  %s5337_s20 = smov [#allocation5]  }
   0x3   :  { %s19_s19 = sshll.u32 %s5336_s18, 4  ;;  %s29_s21 = sshll.u32 %s5337_s20, 4  ;;  %s20_s19 = int_to_ptr.vmem [resolvable:$true] %s19_s19  ;;  %s30_s21 = int_to_ptr.vmem [resolvable:$true] %s29_s21 }
   0x4   :  { %s5264_s24 = scalar_lea.hbm %s5482_s0, 3840 }
   0x5   :  { %p5265_p0 = scmp.ne.s32.totalorder %s5482_s0, %s5264_s24  ;;  %p5268_p1 = scmp.lt.u32.totalorder %s5264_s24, %s5482_s0 }
   0x7   :  { %p5270_p2 = pnand %p5268_p1, %p5265_p0 }
   0x9   :  { %5273 = shalt.err (!%p5270_p2)
}
   0xa   :  { %s5274_s29 = scalar_lea.vmem %s20_s19, 3840  ;;  %p5279_p4 = scmp.lt.s32.totalorder %s20_s19, %s20_s19 }
   0xb   :  { %p5275_p3 = scmp.ne.s32.totalorder %s20_s19, %s5274_s29  ;;  %p5280_p5 = scmp.lt.s32.totalorder %s5274_s29, %s5274_s29 }
   0xd   :  { %p5281_p6 = por %p5280_p5, %p5279_p4 }
   0xf   :  { %p5282_p7 = pnand %p5281_p6, %p5275_p3 }
  0x11   :  { %5285 = shalt.err (!%p5282_p7)
}
  0x12   :  { %22 = dma.hbm_to_vmem [thread:$0]  %s5482_s0, 3840, %s20_s19, [#allocation3]  }
  0x13   :  { %s5286_s9 = scalar_lea.hbm %s5483_s1, 15360 }
  0x14   :  { %p5287_p8 = scmp.ne.s32.totalorder %s5483_s1, %s5286_s9  ;;  %p5290_p9 = scmp.lt.u32.totalorder %s5286_s9, %s5483_s1 }
  0x16   :  { %p5292_p10 = pnand %p5290_p9, %p5287_p8 }
  0x18   :  { %5295 = shalt.err (!%p5292_p10)
}
  0x19   :  { %s5296_s14 = scalar_lea.vmem %s30_s21, 15360  ;;  %p5301_p12 = scmp.lt.s32.totalorder %s30_s21, %s30_s21 }
  0x1a   :  { %p5297_p11 = scmp.ne.s32.totalorder %s30_s21, %s5296_s14  ;;  %p5302_p13 = scmp.lt.s32.totalorder %s5296_s14, %s5296_s14 }
  0x1c   :  { %p5303_p0 = por %p5302_p13, %p5301_p12 }
  0x1e   :  { %p5304_p1 = pnand %p5303_p0, %p5297_p11 }
  0x20   :  { %5307 = shalt.err (!%p5304_p1)
}
  0x21   :  { %32 = dma.hbm_to_vmem [thread:$0]  %s5483_s1, 15360, %s30_s21, [#allocation6]  }
  0x22   :  { %5330 = dma.done.wait [#allocation3], 3840  }
  0x23   :  { %5331 = vsyncadd [#allocation3], 4294963456 }
  0x24   :  { %5332 = dma.done.wait [#allocation6], 15360  }
  0x25   :  { %5333 = vsyncadd [#allocation6], 4294951936  ;;  %v236_v0 = vlaneseq  ;;  %v5338_v1 = vmov 1983009808   ;;  %v76_v6 = vld [vmem:[#allocation5 + $0x8] sm:$0xff]  ;;  %v75_v7 = vld [vmem:[#allocation5] sm:$0xff] }
  0x26   :  { %v234_v2 = vunpack.c.l.s4 %v5338_v1  ;;  %v136_v8 = vld [vmem:[#allocation5 + $0x1e8] sm:$0xff]  ;;  %862 = vmatprep.subr.mxu1 %v76_v6  ;;  %v135_v9 = vld [vmem:[#allocation5 + $0x1e0] sm:$0xff]  ;;  %v45_v10 = vld [vmem:[#allocation2] sm:$0xff]  ;;  %vm5069_vm0 = vcmask 58368   ;;  %vm5081_vm1 = vcmask 7168   ;;  %s5339_s19 = smov [#allocation7]  }
  0x27   :  { %v5394_v3 = vshrl.u32 %v236_v0, 7  ;;  %2962 = vmatprep.subr.mxu0 %v136_v8  ;;  %v78_v11 = vld [vmem:[#allocation5 + $0x18] sm:$0xff]  ;;  %863 = vmatpush1.xpose.msra.mxu1 %v75_v7  ;;  %v232_v12 = vcombine.high %v45_v10, %v45_v10  ;;  %v60_v14 = vld [vmem:[#allocation2 + $0x78] sm:$0xff]  ;;  %v77_v21 = vld [vmem:[#allocation5 + $0x10] sm:$0xff]  ;;  %s5100_s20 = sshll.u32 %s5339_s19, 4  ;;  %vm5092_vm2 = vcmask 9216   ;;  %s5101_s20 = int_to_ptr.vmem [resolvable:$true] %s5100_s20 }
  0x28   :  { %v235_v4 = vunpack.c.0.s8 %v234_v2  ;;  %2963 = vmatpush1.xpose.msra.mxu0 %v135_v9  ;;  %v138_v15 = vld [vmem:[#allocation5 + $0x1f8] sm:$0xff]  ;;  %932 = vmatprep.subr.mxu1 %v78_v11  ;;  %v487_v16 = vcombine.high %v60_v14, %v60_v14  ;;  %v137_v23 = vld [vmem:[#allocation5 + $0x1f0] sm:$0xff]  ;;  %v80_v26 = vld [vmem:[#allocation5 + $0x28] sm:$0xff]  ;;  %s5308_s21 = scalar_lea.vmem %s5101_s20, 32  ;;  %p5313_p3 = scmp.lt.s32.totalorder %s5101_s20, %s5101_s20 }
  0x29   :  { %3032 = vmatprep.subr.mxu0 %v138_v15  ;;  %v46_v25 = vld [vmem:[#allocation2 + $0x8] sm:$0xff]  ;;  %v61_v28 = vld [vmem:[#allocation2 + $0x80] sm:$0xff]  ;;  %v140_v29 = vld [vmem:[#allocation5 + $0x208] sm:$0xff]  ;;  %p5309_p2 = scmp.ne.s32.totalorder %s5101_s20, %s5308_s21  ;;  %p5314_p4 = scmp.lt.s32.totalorder %s5308_s21, %s5308_s21 }
  0x2a   :  { %v5397_v5 = vsub.s32 %v235_v4, %v5394_v3  ;;  %v79_v32 = vld [vmem:[#allocation5 + $0x20] sm:$0xff]  ;;  %v249_v34 = vcombine.high %v46_v25, %v46_v25  ;;  %v504_v37 = vcombine.high %v61_v28, %v61_v28  ;;  %v82_v38 = vld [vmem:[#allocation5 + $0x38] sm:$0xff]  ;;  %v81_v42 = vld [vmem:[#allocation5 + $0x30] sm:$0xff] }
  0x2b   :  { %v139_v35 = vld [vmem:[#allocation5 + $0x200] sm:$0xff]  ;;  %v142_v39 = vld [vmem:[#allocation5 + $0x218] sm:$0xff]  ;;  %v141_v44 = vld [vmem:[#allocation5 + $0x210] sm:$0xff]  ;;  %p5315_p5 = por %p5314_p4, %p5313_p3 }
  0x2c   :  { %v239_v13 = vrot.slane %v45_v10, %v5397_v5  ;;  %v494_v17 = vrot.slane %v60_v14, %v5397_v5  ;;  %v246_v19 = vrot.slane %v232_v12, %v5397_v5  ;;  %v501_v22 = vrot.slane %v487_v16, %v5397_v5  ;;  %v47_v46 = vld [vmem:[#allocation2 + $0x10] sm:$0xff]  ;;  %v84_v47 = vld [vmem:[#allocation5 + $0x48] sm:$0xff]  ;;  %v62_v48 = vld [vmem:[#allocation2 + $0x88] sm:$0xff] }
  0x2d   :  { %v256_v30 = vrot.slane %v46_v25, %v5397_v5  ;;  %v511_v31 = vrot.slane %v61_v28, %v5397_v5  ;;  %v263_v40 = vrot.slane %v249_v34, %v5397_v5  ;;  %v518_v41 = vrot.slane %v504_v37, %v5397_v5  ;;  %v144_v49 = vld [vmem:[#allocation5 + $0x228] sm:$0xff]  ;;  %v83_v52 = vld [vmem:[#allocation5 + $0x40] sm:$0xff]  ;;  %v86_v58 = vld [vmem:[#allocation5 + $0x58] sm:$0xff]  ;;  %p5316_p6 = pnand %p5315_p5, %p5309_p2 }
  0x2e   :  { %v247_v18 = vcombine.high %v239_v13, %v239_v13  ;;  %v502_v20 = vcombine.high %v494_v17, %v494_v17  ;;  %v248_v24 = vcombine.high %v246_v19, %v246_v19  ;;  %v503_v27 = vcombine.high %v501_v22, %v501_v22  ;;  %v143_v55 = vld [vmem:[#allocation5 + $0x220] sm:$0xff]  ;;  %v146_v59 = vld [vmem:[#allocation5 + $0x238] sm:$0xff]  ;;  %v85_v62 = vld [vmem:[#allocation5 + $0x50] sm:$0xff] }
  0x2f   :  { %v264_v33 = vcombine.high %v256_v30, %v256_v30  ;;  %v519_v36 = vcombine.high %v511_v31, %v511_v31  ;;  %v265_v43 = vcombine.high %v263_v40, %v263_v40  ;;  %v520_v45 = vcombine.high %v518_v41, %v518_v41  ;;  %v145_v0 = vld [vmem:[#allocation5 + $0x230] sm:$0xff]  ;;  %v48_v2 = vld [vmem:[#allocation2 + $0x18] sm:$0xff]  ;;  %v63_v6 = vld [vmem:[#allocation2 + $0x90] sm:$0xff] }
  0x30   :  { %926 = vmatprep.mubr.f32.mxu1 %v247_v18  ;;  %3026 = vmatprep.mubr.f32.mxu0 %v502_v20  ;;  %v273_v50 = vrot.slane %v47_v46, %v5397_v5  ;;  %v528_v51 = vrot.slane %v62_v48, %v5397_v5  ;;  %v266_v54 = vcombine.high %v47_v46, %v47_v46  ;;  %v88_v4 = vld [vmem:[#allocation5 + $0x68] sm:$0xff]  ;;  %v87_v10 = vld [vmem:[#allocation5 + $0x60] sm:$0xff]  ;;  %v90_v16 = vld [vmem:[#allocation5 + $0x78] sm:$0xff] }
  0x31   :  { %927 = vmatmul.mubr.f32.vlgmr.msra.gmra.mrb[0].mxu1 %v239_v13  ;;  %3027 = vmatmul.mubr.f32.vlgmr.msra.gmra.mrb[0].mxu0 %v494_v17  ;;  %v521_v57 = vcombine.high %v62_v48, %v62_v48  ;;  %v148_v7 = vld [vmem:[#allocation5 + $0x248] sm:$0xff]  ;;  %v290_v8 = vrot.slane %v48_v2, %v5397_v5  ;;  %v545_v9 = vrot.slane %v63_v6, %v5397_v5  ;;  %v147_v13 = vld [vmem:[#allocation5 + $0x240] sm:$0xff]  ;;  %v150_v17 = vld [vmem:[#allocation5 + $0x258] sm:$0xff] }
  0x32   :  { %933 = vmatpush1.xpose.msra.mxu1 %v77_v21  ;;  %3033 = vmatpush1.xpose.msra.mxu0 %v137_v23  ;;  %v281_v53 = vcombine.high %v273_v50, %v273_v50  ;;  %v536_v56 = vcombine.high %v528_v51, %v528_v51  ;;  %v280_v60 = vrot.slane %v266_v54, %v5397_v5  ;;  %v89_v20 = vld [vmem:[#allocation5 + $0x70] sm:$0xff]  ;;  %v92_v25 = vld [vmem:[#allocation5 + $0x88] sm:$0xff]  ;;  %v154_v37 = vld [vmem:[#allocation5 + $0x278] sm:$0xff] }
  0x33   :  { %996 = vmatprep.mubr.f32.mxu1 %v248_v24  ;;  %1002 = vmatprep.subr.mxu1 %v80_v26  ;;  %v535_v61 = vrot.slane %v521_v57, %v5397_v5  ;;  %v298_v11 = vcombine.high %v290_v8, %v290_v8  ;;  %v283_v12 = vcombine.high %v48_v2, %v48_v2  ;;  %v49_v24 = vld [vmem:[#allocation2 + $0x20] sm:$0xff]  ;;  %v64_v26 = vld [vmem:[#allocation2 + $0x98] sm:$0xff]  ;;  %v158_v57 = vld [vmem:[#allocation5 + $0x298] sm:$0xff] }
  0x34   :  { %3096 = vmatprep.mubr.f32.mxu0 %v503_v27  ;;  %3102 = vmatprep.subr.mxu0 %v140_v29  ;;  %v282_v63 = vcombine.high %v280_v60, %v280_v60  ;;  %v553_v14 = vcombine.high %v545_v9, %v545_v9  ;;  %v538_v15 = vcombine.high %v63_v6, %v63_v6  ;;  %v152_v27 = vld [vmem:[#allocation5 + $0x268] sm:$0xff]  ;;  %v65_v46 = vld [vmem:[#allocation2 + $0xa0] sm:$0xff]  ;;  %v66_v2 = vld [vmem:[#allocation2 + $0xa8] sm:$0xff] }
  0x35   :  { %v537_v1 = vcombine.high %v535_v61, %v535_v61  ;;  %v297_v18 = vrot.slane %v283_v12, %v5397_v5  ;;  %v307_v28 = vrot.slane %v49_v24, %v5397_v5  ;;  %v562_v29 = vrot.slane %v64_v26, %v5397_v5 }
  0x37   :  { %v299_v21 = vcombine.high %v297_v18, %v297_v18  ;;  %v570_v34 = vcombine.high %v562_v29, %v562_v29 }
  0x39   :  { %997 = vmatmul.mubr.f32.vlgmr.msra.gmra.mrb[0].mxu1 %v246_v19  ;;  %3097 = vmatmul.mubr.f32.vlgmr.msra.gmra.mrb[0].mxu0 %v501_v22  ;;  %v552_v19 = vrot.slane %v538_v15, %v5397_v5  ;;  %v149_v22 = vld [vmem:[#allocation5 + $0x250] sm:$0xff]  ;;  %v162_v15 = vld [vmem:[#allocation5 + $0x2b8] sm:$0xff] }
  0x3a   :  { %1003 = vmatpush1.xpose.msra.mxu1 %v79_v32  ;;  %3103 = vmatpush1.xpose.msra.mxu0 %v139_v35  ;;  %v300_v32 = vcombine.high %v49_v24, %v49_v24  ;;  %v555_v35 = vcombine.high %v64_v26, %v64_v26  ;;  %v67_v24 = vld [vmem:[#allocation2 + $0xb0] sm:$0xff] }
  0x3b   :  { %1066 = vmatprep.mubr.f32.mxu1 %v264_v33  ;;  %1072 = vmatprep.subr.mxu1 %v82_v38  ;;  %v554_v23 = vcombine.high %v552_v19, %v552_v19  ;;  %v151_v33 = vld [vmem:[#allocation5 + $0x260] sm:$0xff] }
  0x3c   :  { %3166 = vmatprep.mubr.f32.mxu0 %v519_v36  ;;  %3172 = vmatprep.subr.mxu0 %v142_v39  ;;  %v94_v36 = vld [vmem:[#allocation5 + $0x98] sm:$0xff]  ;;  %v314_v38 = vrot.slane %v300_v32, %v5397_v5  ;;  %v569_v39 = vrot.slane %v555_v35, %v5397_v5 }
  0x3d   :  { %v166_v35 = vld [vmem:[#allocation5 + $0x2d8] sm:$0xff] }
  0x41   :  { %1067 = vmatmul.mubr.f32.vlgmr.msra.gmra.mrb[0].mxu1 %v256_v30  ;;  %3167 = vmatmul.mubr.f32.vlgmr.msra.gmra.mrb[0].mxu0 %v511_v31  ;;  %v91_v30 = vld [vmem:[#allocation5 + $0x80] sm:$0xff]  ;;  %v315_v31 = vcombine.high %v307_v28, %v307_v28 }
  0x42   :  { %1073 = vmatpush1.xpose.msra.mxu1 %v81_v42  ;;  %3173 = vmatpush1.xpose.msra.mxu0 %v141_v44  ;;  %v153_v42 = vld [vmem:[#allocation5 + $0x270] sm:$0xff]  ;;  %v50_v44 = vld [vmem:[#allocation2 + $0x28] sm:$0xff] }
  0x43   :  { %1136 = vmatprep.mubr.f32.mxu1 %v265_v43  ;;  %1142 = vmatprep.subr.mxu1 %v84_v47  ;;  %v571_v43 = vcombine.high %v569_v39, %v569_v39  ;;  %v156_v47 = vld [vmem:[#allocation5 + $0x288] sm:$0xff]  ;;  %v324_v48 = vrot.slane %v50_v44, %v5397_v5 }
  0x44   :  { %3236 = vmatprep.mubr.f32.mxu0 %v520_v45  ;;  %3242 = vmatprep.subr.mxu0 %v144_v49  ;;  %v96_v45 = vld [vmem:[#allocation5 + $0xa8] sm:$0xff]  ;;  %v579_v49 = vrot.slane %v65_v46, %v5397_v5 }
  0x46   :  { %v587_v54 = vcombine.high %v579_v49, %v579_v49 }
  0x49   :  { %1137 = vmatmul.mubr.f32.vlgmr.msra.gmra.mrb[0].mxu1 %v263_v40  ;;  %3237 = vmatmul.mubr.f32.vlgmr.msra.gmra.mrb[0].mxu0 %v518_v41  ;;  %v93_v40 = vld [vmem:[#allocation5 + $0x90] sm:$0xff]  ;;  %v316_v41 = vcombine.high %v314_v38, %v314_v38 }
  0x4a   :  { %1143 = vmatpush1.xpose.msra.mxu1 %v83_v52  ;;  %3243 = vmatpush1.xpose.msra.mxu0 %v143_v55  ;;  %v317_v52 = vcombine.high %v50_v44, %v50_v44  ;;  %v572_v55 = vcombine.high %v65_v46, %v65_v46  ;;  %v68_v44 = vld [vmem:[#allocation2 + $0xb8] sm:$0xff] }
  0x4b   :  { %1206 = vmatprep.mubr.f32.mxu1 %v281_v53  ;;  %1212 = vmatprep.subr.mxu1 %v86_v58  ;;  %v155_v53 = vld [vmem:[#allocation5 + $0x280] sm:$0xff] }
  0x4c   :  { %3306 = vmatprep.mubr.f32.mxu0 %v536_v56  ;;  %3312 = vmatprep.subr.mxu0 %v146_v59  ;;  %v98_v56 = vld [vmem:[#allocation5 + $0xb8] sm:$0xff]  ;;  %v331_v58 = vrot.slane %v317_v52, %v5397_v5  ;;  %v586_v59 = vrot.slane %v572_v55, %v5397_v5 }
  0x4d   :  { %v170_v55 = vld [vmem:[#allocation5 + $0x2f8] sm:$0xff] }
  0x51   :  { %1207 = vmatmul.mubr.f32.vlgmr.msra.gmra.mrb[0].mxu1 %v273_v50  ;;  %3307 = vmatmul.mubr.f32.vlgmr.msra.gmra.mrb[0].mxu0 %v528_v51  ;;  %v95_v50 = vld [vmem:[#allocation5 + $0xa0] sm:$0xff]  ;;  %v332_v51 = vcombine.high %v324_v48, %v324_v48 }
  0x52   :  { %1213 = vmatpush1.xpose.msra.mxu1 %v85_v62  ;;  %3313 = vmatpush1.xpose.msra.mxu0 %v145_v0  ;;  %v157_v62 = vld [vmem:[#allocation5 + $0x290] sm:$0xff]  ;;  %v51_v0 = vld [vmem:[#allocation2 + $0x30] sm:$0xff] }
  0x53   :  { %1276 = vmatprep.mubr.f32.mxu1 %v282_v63  ;;  %1282 = vmatprep.subr.mxu1 %v88_v4  ;;  %v588_v63 = vcombine.high %v586_v59, %v586_v59  ;;  %v160_v4 = vld [vmem:[#allocation5 + $0x2a8] sm:$0xff]  ;;  %v341_v6 = vrot.slane %v51_v0, %v5397_v5 }
  0x54   :  { %3376 = vmatprep.mubr.f32.mxu0 %v537_v1  ;;  %3382 = vmatprep.subr.mxu0 %v148_v7  ;;  %v100_v1 = vld [vmem:[#allocation5 + $0xc8] sm:$0xff]  ;;  %v596_v7 = vrot.slane %v66_v2, %v5397_v5 }
  0x56   :  { %v604_v12 = vcombine.high %v596_v7, %v596_v7 }
  0x59   :  { %1277 = vmatmul.mubr.f32.vlgmr.msra.gmra.mrb[0].mxu1 %v280_v60  ;;  %3377 = vmatmul.mubr.f32.vlgmr.msra.gmra.mrb[0].mxu0 %v535_v61  ;;  %v97_v60 = vld [vmem:[#allocation5 + $0xb0] sm:$0xff]  ;;  %v333_v61 = vcombine.high %v331_v58, %v331_v58 }
  0x5a   :  { %1283 = vmatpush1.xpose.msra.mxu1 %v87_v10  ;;  %3383 = vmatpush1.xpose.msra.mxu0 %v147_v13  ;;  %v334_v10 = vcombine.high %v51_v0, %v51_v0  ;;  %v589_v13 = vcombine.high %v66_v2, %v66_v2  ;;  %v69_v0 = vld [vmem:[#allocation2 + $0xc0] sm:$0xff] }
  0x5b   :  { %1346 = vmatprep.mubr.f32.mxu1 %v298_v11  ;;  %1352 = vmatprep.subr.mxu1 %v90_v16  ;;  %v159_v11 = vld [vmem:[#allocation5 + $0x2a0] sm:$0xff] }
  0x5c   :  { %3446 = vmatprep.mubr.f32.mxu0 %v553_v14  ;;  %3452 = vmatprep.subr.mxu0 %v150_v17  ;;  %v102_v14 = vld [vmem:[#allocation5 + $0xd8] sm:$0xff]  ;;  %v348_v16 = vrot.slane %v334_v10, %v5397_v5  ;;  %v603_v17 = vrot.slane %v589_v13, %v5397_v5 }
  0x5d   :  { %v174_v13 = vld [vmem:[#allocation5 + $0x318] sm:$0xff] }
  0x61   :  { %1347 = vmatmul.mubr.f32.vlgmr.msra.gmra.mrb[0].mxu1 %v290_v8  ;;  %3447 = vmatmul.mubr.f32.vlgmr.msra.gmra.mrb[0].mxu0 %v545_v9  ;;  %v99_v8 = vld [vmem:[#allocation5 + $0xc0] sm:$0xff]  ;;  %v349_v9 = vcombine.high %v341_v6, %v341_v6 }
  0x62   :  { %1353 = vmatpush1.xpose.msra.mxu1 %v89_v20  ;;  %3453 = vmatpush1.xpose.msra.mxu0 %v149_v22  ;;  %v161_v20 = vld [vmem:[#allocation5 + $0x2b0] sm:$0xff]  ;;  %v52_v22 = vld [vmem:[#allocation2 + $0x38] sm:$0xff] }
  0x63   :  { %1416 = vmatprep.mubr.f32.mxu1 %v299_v21  ;;  %1422 = vmatprep.subr.mxu1 %v92_v25  ;;  %v605_v21 = vcombine.high %v603_v17, %v603_v17  ;;  %v164_v25 = vld [vmem:[#allocation5 + $0x2c8] sm:$0xff]  ;;  %v358_v26 = vrot.slane %v52_v22, %v5397_v5 }
  0x64   :  { %3516 = vmatprep.mubr.f32.mxu0 %v554_v23  ;;  %3522 = vmatprep.subr.mxu0 %v152_v27  ;;  %v104_v23 = vld [vmem:[#allocation5 + $0xe8] sm:$0xff]  ;;  %v613_v27 = vrot.slane %v67_v24, %v5397_v5 }
  0x66   :  { %v621_v32 = vcombine.high %v613_v27, %v613_v27 }
  0x69   :  { %1417 = vmatmul.mubr.f32.vlgmr.msra.gmra.mrb[0].mxu1 %v297_v18  ;;  %3517 = vmatmul.mubr.f32.vlgmr.msra.gmra.mrb[0].mxu0 %v552_v19  ;;  %v101_v18 = vld [vmem:[#allocation5 + $0xd0] sm:$0xff]  ;;  %v350_v19 = vcombine.high %v348_v16, %v348_v16 }
  0x6a   :  { %1423 = vmatpush1.xpose.msra.mxu1 %v91_v30  ;;  %3523 = vmatpush1.xpose.msra.mxu0 %v151_v33  ;;  %v351_v30 = vcombine.high %v52_v22, %v52_v22  ;;  %v606_v33 = vcombine.high %v67_v24, %v67_v24  ;;  %v70_v22 = vld [vmem:[#allocation2 + $0xc8] sm:$0xff] }
  0x6b   :  { %1486 = vmatprep.mubr.f32.mxu1 %v315_v31  ;;  %1492 = vmatprep.subr.mxu1 %v94_v36  ;;  %v163_v31 = vld [vmem:[#allocation5 + $0x2c0] sm:$0xff] }
  0x6c   :  { %3586 = vmatprep.mubr.f32.mxu0 %v570_v34  ;;  %3592 = vmatprep.subr.mxu0 %v154_v37  ;;  %v106_v34 = vld [vmem:[#allocation5 + $0xf8] sm:$0xff]  ;;  %v365_v36 = vrot.slane %v351_v30, %v5397_v5  ;;  %v620_v37 = vrot.slane %v606_v33, %v5397_v5 }
  0x6d   :  { %v178_v33 = vld [vmem:[#allocation5 + $0x338] sm:$0xff] }
  0x71   :  { %1487 = vmatmul.mubr.f32.vlgmr.msra.gmra.mrb[0].mxu1 %v307_v28  ;;  %3587 = vmatmul.mubr.f32.vlgmr.msra.gmra.mrb[0].mxu0 %v562_v29  ;;  %v103_v28 = vld [vmem:[#allocation5 + $0xe0] sm:$0xff]  ;;  %v366_v29 = vcombine.high %v358_v26, %v358_v26 }
  0x72   :  { %1493 = vmatpush1.xpose.msra.mxu1 %v93_v40  ;;  %3593 = vmatpush1.xpose.msra.mxu0 %v153_v42  ;;  %v165_v40 = vld [vmem:[#allocation5 + $0x2d0] sm:$0xff] }
  0x73   :  { %1556 = vmatprep.mubr.f32.mxu1 %v316_v41  ;;  %1562 = vmatprep.subr.mxu1 %v96_v45  ;;  %v622_v41 = vcombine.high %v620_v37, %v620_v37  ;;  %v53_v42 = vld [vmem:[#allocation2 + $0x40] sm:$0xff]  ;;  %v168_v45 = vld [vmem:[#allocation5 + $0x2e8] sm:$0xff] }
  0x74   :  { %3656 = vmatprep.mubr.f32.mxu0 %v571_v43  ;;  %3662 = vmatprep.subr.mxu0 %v156_v47  ;;  %v108_v43 = vld [vmem:[#allocation5 + $0x108] sm:$0xff]  ;;  %v375_v46 = vrot.slane %v53_v42, %v5397_v5  ;;  %v630_v47 = vrot.slane %v68_v44, %v5397_v5 }
  0x76   :  { %v638_v52 = vcombine.high %v630_v47, %v630_v47 }
  0x79   :  { %1557 = vmatmul.mubr.f32.vlgmr.msra.gmra.mrb[0].mxu1 %v314_v38  ;;  %3657 = vmatmul.mubr.f32.vlgmr.msra.gmra.mrb[0].mxu0 %v569_v39  ;;  %v105_v38 = vld [vmem:[#allocation5 + $0xf0] sm:$0xff]  ;;  %v367_v39 = vcombine.high %v365_v36, %v365_v36 }
  0x7a   :  { %1563 = vmatpush1.xpose.msra.mxu1 %v95_v50  ;;  %3663 = vmatpush1.xpose.msra.mxu0 %v155_v53  ;;  %v368_v50 = vcombine.high %v53_v42, %v53_v42  ;;  %v623_v53 = vcombine.high %v68_v44, %v68_v44  ;;  %v71_v42 = vld [vmem:[#allocation2 + $0xd0] sm:$0xff] }
  0x7b   :  { %1626 = vmatprep.mubr.f32.mxu1 %v332_v51  ;;  %1632 = vmatprep.subr.mxu1 %v98_v56  ;;  %v167_v51 = vld [vmem:[#allocation5 + $0x2e0] sm:$0xff] }
  0x7c   :  { %3726 = vmatprep.mubr.f32.mxu0 %v587_v54  ;;  %3732 = vmatprep.subr.mxu0 %v158_v57  ;;  %v110_v54 = vld [vmem:[#allocation5 + $0x118] sm:$0xff]  ;;  %v382_v56 = vrot.slane %v368_v50, %v5397_v5  ;;  %v637_v57 = vrot.slane %v623_v53, %v5397_v5 }
  0x7d   :  { %v182_v53 = vld [vmem:[#allocation5 + $0x358] sm:$0xff] }
  0x81   :  { %1627 = vmatmul.mubr.f32.vlgmr.msra.gmra.mrb[0].mxu1 %v324_v48  ;;  %3727 = vmatmul.mubr.f32.vlgmr.msra.gmra.mrb[0].mxu0 %v579_v49  ;;  %v107_v48 = vld [vmem:[#allocation5 + $0x100] sm:$0xff]  ;;  %v383_v49 = vcombine.high %v375_v46, %v375_v46 }
  0x82   :  { %1633 = vmatpush1.xpose.msra.mxu1 %v97_v60  ;;  %3733 = vmatpush1.xpose.msra.mxu0 %v157_v62  ;;  %v169_v60 = vld [vmem:[#allocation5 + $0x2f0] sm:$0xff]  ;;  %v54_v62 = vld [vmem:[#allocation2 + $0x48] sm:$0xff] }
  0x83   :  { %1696 = vmatprep.mubr.f32.mxu1 %v333_v61  ;;  %1702 = vmatprep.subr.mxu1 %v100_v1  ;;  %v639_v61 = vcombine.high %v637_v57, %v637_v57  ;;  %v172_v1 = vld [vmem:[#allocation5 + $0x308] sm:$0xff]  ;;  %v392_v2 = vrot.slane %v54_v62, %v5397_v5 }
  0x84   :  { %3796 = vmatprep.mubr.f32.mxu0 %v588_v63  ;;  %3802 = vmatprep.subr.mxu0 %v160_v4  ;;  %v112_v63 = vld [vmem:[#allocation5 + $0x128] sm:$0xff]  ;;  %v647_v4 = vrot.slane %v69_v0, %v5397_v5 }
  0x86   :  { %v655_v10 = vcombine.high %v647_v4, %v647_v4 }
  0x89   :  { %1697 = vmatmul.mubr.f32.vlgmr.msra.gmra.mrb[0].mxu1 %v331_v58  ;;  %3797 = vmatmul.mubr.f32.vlgmr.msra.gmra.mrb[0].mxu0 %v586_v59  ;;  %v109_v58 = vld [vmem:[#allocation5 + $0x110] sm:$0xff]  ;;  %v384_v59 = vcombine.high %v382_v56, %v382_v56 }
  0x8a   :  { %1703 = vmatpush1.xpose.msra.mxu1 %v99_v8  ;;  %3803 = vmatpush1.xpose.msra.mxu0 %v159_v11  ;;  %v385_v8 = vcombine.high %v54_v62, %v54_v62  ;;  %v640_v11 = vcombine.high %v69_v0, %v69_v0  ;;  %v72_v62 = vld [vmem:[#allocation2 + $0xd8] sm:$0xff] }
  0x8b   :  { %1766 = vmatprep.mubr.f32.mxu1 %v349_v9  ;;  %1772 = vmatprep.subr.mxu1 %v102_v14  ;;  %v171_v9 = vld [vmem:[#allocation5 + $0x300] sm:$0xff] }
  0x8c   :  { %3866 = vmatprep.mubr.f32.mxu0 %v604_v12  ;;  %3872 = vmatprep.subr.mxu0 %v162_v15  ;;  %v114_v12 = vld [vmem:[#allocation5 + $0x138] sm:$0xff]  ;;  %v399_v14 = vrot.slane %v385_v8, %v5397_v5  ;;  %v654_v15 = vrot.slane %v640_v11, %v5397_v5 }
  0x8d   :  { %v186_v11 = vld [vmem:[#allocation5 + $0x378] sm:$0xff] }
  0x91   :  { %1767 = vmatmul.mubr.f32.vlgmr.msra.gmra.mrb[0].mxu1 %v341_v6  ;;  %3867 = vmatmul.mubr.f32.vlgmr.msra.gmra.mrb[0].mxu0 %v596_v7  ;;  %v111_v6 = vld [vmem:[#allocation5 + $0x120] sm:$0xff]  ;;  %v400_v7 = vcombine.high %v392_v2, %v392_v2 }
  0x92   :  { %1773 = vmatpush1.xpose.msra.mxu1 %v101_v18  ;;  %3873 = vmatpush1.xpose.msra.mxu0 %v161_v20  ;;  %v173_v18 = vld [vmem:[#allocation5 + $0x310] sm:$0xff]  ;;  %v55_v20 = vld [vmem:[#allocation2 + $0x50] sm:$0xff] }
  0x93   :  { %1836 = vmatprep.mubr.f32.mxu1 %v350_v19  ;;  %1842 = vmatprep.subr.mxu1 %v104_v23  ;;  %v656_v19 = vcombine.high %v654_v15, %v654_v15  ;;  %v176_v23 = vld [vmem:[#allocation5 + $0x328] sm:$0xff]  ;;  %v409_v24 = vrot.slane %v55_v20, %v5397_v5 }
  0x94   :  { %3936 = vmatprep.mubr.f32.mxu0 %v605_v21  ;;  %3942 = vmatprep.subr.mxu0 %v164_v25  ;;  %v116_v21 = vld [vmem:[#allocation5 + $0x148] sm:$0xff]  ;;  %v664_v25 = vrot.slane %v70_v22, %v5397_v5 }
  0x96   :  { %v672_v30 = vcombine.high %v664_v25, %v664_v25 }
  0x99   :  { %1837 = vmatmul.mubr.f32.vlgmr.msra.gmra.mrb[0].mxu1 %v348_v16  ;;  %3937 = vmatmul.mubr.f32.vlgmr.msra.gmra.mrb[0].mxu0 %v603_v17  ;;  %v113_v16 = vld [vmem:[#allocation5 + $0x130] sm:$0xff]  ;;  %v401_v17 = vcombine.high %v399_v14, %v399_v14 }
  0x9a   :  { %1843 = vmatpush1.xpose.msra.mxu1 %v103_v28  ;;  %3943 = vmatpush1.xpose.msra.mxu0 %v163_v31  ;;  %v402_v28 = vcombine.high %v55_v20, %v55_v20  ;;  %v657_v31 = vcombine.high %v70_v22, %v70_v22  ;;  %v73_v20 = vld [vmem:[#allocation2 + $0xe0] sm:$0xff] }
  0x9b   :  { %1906 = vmatprep.mubr.f32.mxu1 %v366_v29  ;;  %1912 = vmatprep.subr.mxu1 %v106_v34  ;;  %v175_v29 = vld [vmem:[#allocation5 + $0x320] sm:$0xff] }
  0x9c   :  { %4006 = vmatprep.mubr.f32.mxu0 %v621_v32  ;;  %4012 = vmatprep.subr.mxu0 %v166_v35  ;;  %v118_v32 = vld [vmem:[#allocation5 + $0x158] sm:$0xff]  ;;  %v416_v34 = vrot.slane %v402_v28, %v5397_v5  ;;  %v671_v35 = vrot.slane %v657_v31, %v5397_v5 }
  0x9d   :  { %v190_v31 = vld [vmem:[#allocation5 + $0x398] sm:$0xff] }
  0xa1   :  { %1907 = vmatmul.mubr.f32.vlgmr.msra.gmra.mrb[0].mxu1 %v358_v26  ;;  %4007 = vmatmul.mubr.f32.vlgmr.msra.gmra.mrb[0].mxu0 %v613_v27  ;;  %v115_v26 = vld [vmem:[#allocation5 + $0x140] sm:$0xff]  ;;  %v417_v27 = vcombine.high %v409_v24, %v409_v24 }
  0xa2   :  { %1913 = vmatpush1.xpose.msra.mxu1 %v105_v38  ;;  %4013 = vmatpush1.xpose.msra.mxu0 %v165_v40  ;;  %v177_v38 = vld [vmem:[#allocation5 + $0x330] sm:$0xff]  ;;  %v56_v40 = vld [vmem:[#allocation2 + $0x58] sm:$0xff] }
  0xa3   :  { %1976 = vmatprep.mubr.f32.mxu1 %v367_v39  ;;  %1982 = vmatprep.subr.mxu1 %v108_v43  ;;  %v673_v39 = vcombine.high %v671_v35, %v671_v35  ;;  %v180_v43 = vld [vmem:[#allocation5 + $0x348] sm:$0xff]  ;;  %v426_v44 = vrot.slane %v56_v40, %v5397_v5 }
  0xa4   :  { %4076 = vmatprep.mubr.f32.mxu0 %v622_v41  ;;  %4082 = vmatprep.subr.mxu0 %v168_v45  ;;  %v120_v41 = vld [vmem:[#allocation5 + $0x168] sm:$0xff]  ;;  %v681_v45 = vrot.slane %v71_v42, %v5397_v5 }
  0xa6   :  { %v689_v50 = vcombine.high %v681_v45, %v681_v45 }
  0xa9   :  { %1977 = vmatmul.mubr.f32.vlgmr.msra.gmra.mrb[0].mxu1 %v365_v36  ;;  %4077 = vmatmul.mubr.f32.vlgmr.msra.gmra.mrb[0].mxu0 %v620_v37  ;;  %v117_v36 = vld [vmem:[#allocation5 + $0x150] sm:$0xff]  ;;  %v418_v37 = vcombine.high %v416_v34, %v416_v34 }
  0xaa   :  { %1983 = vmatpush1.xpose.msra.mxu1 %v107_v48  ;;  %4083 = vmatpush1.xpose.msra.mxu0 %v167_v51  ;;  %v419_v48 = vcombine.high %v56_v40, %v56_v40  ;;  %v674_v51 = vcombine.high %v71_v42, %v71_v42  ;;  %v74_v40 = vld [vmem:[#allocation2 + $0xe8] sm:$0xff] }
  0xab   :  { %2046 = vmatprep.mubr.f32.mxu1 %v383_v49  ;;  %2052 = vmatprep.subr.mxu1 %v110_v54  ;;  %v179_v49 = vld [vmem:[#allocation5 + $0x340] sm:$0xff] }
  0xac   :  { %4146 = vmatprep.mubr.f32.mxu0 %v638_v52  ;;  %4152 = vmatprep.subr.mxu0 %v170_v55  ;;  %v122_v52 = vld [vmem:[#allocation5 + $0x178] sm:$0xff]  ;;  %v433_v54 = vrot.slane %v419_v48, %v5397_v5  ;;  %v688_v55 = vrot.slane %v674_v51, %v5397_v5 }
  0xad   :  { %v194_v51 = vld [vmem:[#allocation5 + $0x3b8] sm:$0xff] }
  0xb1   :  { %2047 = vmatmul.mubr.f32.vlgmr.msra.gmra.mrb[0].mxu1 %v375_v46  ;;  %4147 = vmatmul.mubr.f32.vlgmr.msra.gmra.mrb[0].mxu0 %v630_v47  ;;  %v119_v46 = vld [vmem:[#allocation5 + $0x160] sm:$0xff]  ;;  %v434_v47 = vcombine.high %v426_v44, %v426_v44 }
  0xb2   :  { %2053 = vmatpush1.xpose.msra.mxu1 %v109_v58  ;;  %4153 = vmatpush1.xpose.msra.mxu0 %v169_v60  ;;  %v181_v58 = vld [vmem:[#allocation5 + $0x350] sm:$0xff] }
  0xb3   :  { %2116 = vmatprep.mubr.f32.mxu1 %v384_v59  ;;  %2122 = vmatprep.subr.mxu1 %v112_v63  ;;  %v690_v59 = vcombine.high %v688_v55, %v688_v55  ;;  %v57_v60 = vld [vmem:[#allocation2 + $0x60] sm:$0xff]  ;;  %v184_v63 = vld [vmem:[#allocation5 + $0x368] sm:$0xff] }
  0xb4   :  { %4216 = vmatprep.mubr.f32.mxu0 %v639_v61  ;;  %4222 = vmatprep.subr.mxu0 %v172_v1  ;;  %v124_v61 = vld [vmem:[#allocation5 + $0x188] sm:$0xff]  ;;  %v443_v0 = vrot.slane %v57_v60, %v5397_v5  ;;  %v698_v1 = vrot.slane %v72_v62, %v5397_v5 }
  0xb6   :  { %v706_v8 = vcombine.high %v698_v1, %v698_v1 }
  0xb9   :  { %2117 = vmatmul.mubr.f32.vlgmr.msra.gmra.mrb[0].mxu1 %v382_v56  ;;  %4217 = vmatmul.mubr.f32.vlgmr.msra.gmra.mrb[0].mxu0 %v637_v57  ;;  %v121_v56 = vld [vmem:[#allocation5 + $0x170] sm:$0xff]  ;;  %v435_v57 = vcombine.high %v433_v54, %v433_v54 }
  0xba   :  { %2123 = vmatpush1.xpose.msra.mxu1 %v111_v6  ;;  %4223 = vmatpush1.xpose.msra.mxu0 %v171_v9  ;;  %v436_v6 = vcombine.high %v57_v60, %v57_v60  ;;  %v691_v9 = vcombine.high %v72_v62, %v72_v62  ;;  %v5063_v60 = vld [vmem:[%s5485_s3] sm:$0x3] }
  0xbb   :  { %2186 = vmatprep.mubr.f32.mxu1 %v400_v7  ;;  %2192 = vmatprep.subr.mxu1 %v114_v12  ;;  %v183_v7 = vld [vmem:[#allocation5 + $0x360] sm:$0xff] }
  0xbc   :  { %4286 = vmatprep.mubr.f32.mxu0 %v655_v10  ;;  %4292 = vmatprep.subr.mxu0 %v174_v13  ;;  %v126_v10 = vld [vmem:[#allocation5 + $0x198] sm:$0xff]  ;;  %v450_v12 = vrot.slane %v436_v6, %v5397_v5  ;;  %v705_v13 = vrot.slane %v691_v9, %v5397_v5 }
  0xc1   :  { %2187 = vmatmul.mubr.f32.vlgmr.msra.gmra.mrb[0].mxu1 %v392_v2  ;;  %4287 = vmatmul.mubr.f32.vlgmr.msra.gmra.mrb[0].mxu0 %v647_v4  ;;  %v123_v2 = vld [vmem:[#allocation5 + $0x180] sm:$0xff]  ;;  %v451_v4 = vcombine.high %v443_v0, %v443_v0 }
  0xc2   :  { %2193 = vmatpush1.xpose.msra.mxu1 %v113_v16  ;;  %4293 = vmatpush1.xpose.msra.mxu0 %v173_v18  ;;  %v185_v16 = vld [vmem:[#allocation5 + $0x370] sm:$0xff]  ;;  %v58_v18 = vld [vmem:[#allocation2 + $0x68] sm:$0xff] }
  0xc3   :  { %2256 = vmatprep.mubr.f32.mxu1 %v401_v17  ;;  %2262 = vmatprep.subr.mxu1 %v116_v21  ;;  %v707_v17 = vcombine.high %v705_v13, %v705_v13  ;;  %v188_v21 = vld [vmem:[#allocation5 + $0x388] sm:$0xff]  ;;  %v460_v22 = vrot.slane %v58_v18, %v5397_v5 }
  0xc4   :  { %4356 = vmatprep.mubr.f32.mxu0 %v656_v19  ;;  %4362 = vmatprep.subr.mxu0 %v176_v23  ;;  %v128_v19 = vld [vmem:[#allocation5 + $0x1a8] sm:$0xff]  ;;  %v715_v23 = vrot.slane %v73_v20, %v5397_v5 }
  0xc6   :  { %v723_v28 = vcombine.high %v715_v23, %v715_v23 }
  0xc9   :  { %2257 = vmatmul.mubr.f32.vlgmr.msra.gmra.mrb[0].mxu1 %v399_v14  ;;  %4357 = vmatmul.mubr.f32.vlgmr.msra.gmra.mrb[0].mxu0 %v654_v15  ;;  %v125_v14 = vld [vmem:[#allocation5 + $0x190] sm:$0xff]  ;;  %v452_v15 = vcombine.high %v450_v12, %v450_v12 }
  0xca   :  { %2263 = vmatpush1.xpose.msra.mxu1 %v115_v26  ;;  %4363 = vmatpush1.xpose.msra.mxu0 %v175_v29  ;;  %v453_v26 = vcombine.high %v58_v18, %v58_v18  ;;  %v708_v29 = vcombine.high %v73_v20, %v73_v20 }
  0xcb   :  { %2326 = vmatprep.mubr.f32.mxu1 %v417_v27  ;;  %2332 = vmatprep.subr.mxu1 %v118_v32  ;;  %v187_v27 = vld [vmem:[#allocation5 + $0x380] sm:$0xff] }
  0xcc   :  { %4426 = vmatprep.mubr.f32.mxu0 %v672_v30  ;;  %4432 = vmatprep.subr.mxu0 %v178_v33  ;;  %v130_v30 = vld [vmem:[#allocation5 + $0x1b8] sm:$0xff]  ;;  %v467_v32 = vrot.slane %v453_v26, %v5397_v5  ;;  %v722_v33 = vrot.slane %v708_v29, %v5397_v5 }
  0xd1   :  { %2327 = vmatmul.mubr.f32.vlgmr.msra.gmra.mrb[0].mxu1 %v409_v24  ;;  %4427 = vmatmul.mubr.f32.vlgmr.msra.gmra.mrb[0].mxu0 %v664_v25  ;;  %v127_v24 = vld [vmem:[#allocation5 + $0x1a0] sm:$0xff]  ;;  %v468_v25 = vcombine.high %v460_v22, %v460_v22 }
  0xd2   :  { %2333 = vmatpush1.xpose.msra.mxu1 %v117_v36  ;;  %4433 = vmatpush1.xpose.msra.mxu0 %v177_v38  ;;  %v189_v36 = vld [vmem:[#allocation5 + $0x390] sm:$0xff]  ;;  %v59_v38 = vld [vmem:[#allocation2 + $0x70] sm:$0xff] }
  0xd3   :  { %2396 = vmatprep.mubr.f32.mxu1 %v418_v37  ;;  %2402 = vmatprep.subr.mxu1 %v120_v41  ;;  %v724_v37 = vcombine.high %v722_v33, %v722_v33  ;;  %v192_v41 = vld [vmem:[#allocation5 + $0x3a8] sm:$0xff]  ;;  %v477_v42 = vrot.slane %v59_v38, %v5397_v5 }
  0xd4   :  { %4496 = vmatprep.mubr.f32.mxu0 %v673_v39  ;;  %4502 = vmatprep.subr.mxu0 %v180_v43  ;;  %v132_v39 = vld [vmem:[#allocation5 + $0x1c8] sm:$0xff]  ;;  %v732_v43 = vrot.slane %v74_v40, %v5397_v5 }
  0xd6   :  { %v740_v48 = vcombine.high %v732_v43, %v732_v43 }
  0xd9   :  { %2397 = vmatmul.mubr.f32.vlgmr.msra.gmra.mrb[0].mxu1 %v416_v34  ;;  %4497 = vmatmul.mubr.f32.vlgmr.msra.gmra.mrb[0].mxu0 %v671_v35  ;;  %v129_v34 = vld [vmem:[#allocation5 + $0x1b0] sm:$0xff]  ;;  %v469_v35 = vcombine.high %v467_v32, %v467_v32 }
  0xda   :  { %2403 = vmatpush1.xpose.msra.mxu1 %v119_v46  ;;  %4503 = vmatpush1.xpose.msra.mxu0 %v179_v49  ;;  %v470_v46 = vcombine.high %v59_v38, %v59_v38  ;;  %v725_v49 = vcombine.high %v74_v40, %v74_v40 }
  0xdb   :  { %2466 = vmatprep.mubr.f32.mxu1 %v434_v47  ;;  %2472 = vmatprep.subr.mxu1 %v122_v52  ;;  %v191_v47 = vld [vmem:[#allocation5 + $0x3a0] sm:$0xff] }
  0xdc   :  { %4566 = vmatprep.mubr.f32.mxu0 %v689_v50  ;;  %4572 = vmatprep.subr.mxu0 %v182_v53  ;;  %v134_v50 = vld [vmem:[#allocation5 + $0x1d8] sm:$0xff]  ;;  %v484_v52 = vrot.slane %v470_v46, %v5397_v5  ;;  %v739_v53 = vrot.slane %v725_v49, %v5397_v5 }
  0xe1   :  { %2467 = vmatmul.mubr.f32.vlgmr.msra.gmra.mrb[0].mxu1 %v426_v44  ;;  %4567 = vmatmul.mubr.f32.vlgmr.msra.gmra.mrb[0].mxu0 %v681_v45  ;;  %v131_v44 = vld [vmem:[#allocation5 + $0x1c0] sm:$0xff]  ;;  %v485_v45 = vcombine.high %v477_v42, %v477_v42 }
  0xe2   :  { %2473 = vmatpush1.xpose.msra.mxu1 %v121_v56  ;;  %4573 = vmatpush1.xpose.msra.mxu0 %v181_v58  ;;  %v193_v56 = vld [vmem:[#allocation5 + $0x3b0] sm:$0xff] }
  0xe3   :  { %2536 = vmatprep.mubr.f32.mxu1 %v435_v57  ;;  %2542 = vmatprep.subr.mxu1 %v124_v61  ;;  %v741_v57 = vcombine.high %v739_v53, %v739_v53  ;;  %v5110_v58 = vld [vmem:[%s5484_s2] ss:$0 sm:$0xff] }
  0xe4   :  { %4636 = vmatprep.mubr.f32.mxu0 %v690_v59  ;;  %4642 = vmatprep.subr.mxu0 %v184_v63  ;;  %v5066_v59 = vsub.s32 0, %v5394_v3 }
  0xe9   :  { %2537 = vmatmul.mubr.f32.vlgmr.msra.gmra.mrb[0].mxu1 %v433_v54  ;;  %4637 = vmatmul.mubr.f32.vlgmr.msra.gmra.mrb[0].mxu0 %v688_v55  ;;  %v133_v54 = vld [vmem:[#allocation5 + $0x1d0] sm:$0xff]  ;;  %v486_v55 = vcombine.high %v484_v52, %v484_v52 }
  0xea   :  { %2543 = vmatpush1.xpose.msra.mxu1 %v123_v2  ;;  %4643 = vmatpush1.xpose.msra.mxu0 %v183_v7 }
  0xeb   :  { %2606 = vmatprep.mubr.f32.mxu1 %v451_v4  ;;  %2612 = vmatprep.subr.mxu1 %v126_v10  ;;  %v5067_v4 = vrot.slane %v5063_v60, %v5066_v59 }
  0xec   :  { %4706 = vmatprep.mubr.f32.mxu0 %v706_v8  ;;  %4712 = vmatprep.subr.mxu0 %v186_v11 }
  0xf1   :  { %2607 = vmatmul.mubr.f32.vlgmr.msra.gmra.mrb[0].mxu1 %v443_v0  ;;  %4707 = vmatmul.mubr.f32.vlgmr.msra.gmra.mrb[0].mxu0 %v698_v1  ;;  %v5075_v0 = vsub.s32 1, %v5394_v3 }
  0xf2   :  { %2613 = vmatpush1.xpose.msra.mxu1 %v125_v14  ;;  %4713 = vmatpush1.xpose.msra.mxu0 %v185_v16 }
  0xf3   :  { %2676 = vmatprep.mubr.f32.mxu1 %v452_v15  ;;  %2682 = vmatprep.subr.mxu1 %v128_v19  ;;  %v5076_v7 = vrot.slane %v5063_v60, %v5075_v0 }
  0xf4   :  { %4776 = vmatprep.mubr.f32.mxu0 %v707_v17  ;;  %4782 = vmatprep.subr.mxu0 %v188_v21 }
  0xf9   :  { %2677 = vmatmul.mubr.f32.vlgmr.msra.gmra.mrb[0].mxu1 %v450_v12  ;;  %4777 = vmatmul.mubr.f32.vlgmr.msra.gmra.mrb[0].mxu0 %v705_v13  ;;  %v5111_v13 = vld [vmem:[%s5486_s4] ss:$0 sm:$0xff] }
  0xfa   :  { %2683 = vmatpush1.xpose.msra.mxu1 %v127_v24  ;;  %4783 = vmatpush1.xpose.msra.mxu0 %v187_v27 }
  0xfb   :  { %2746 = vmatprep.mubr.f32.mxu1 %v468_v25  ;;  %2752 = vmatprep.subr.mxu1 %v130_v30 }
  0xfc   :  { %4846 = vmatprep.mubr.f32.mxu0 %v723_v28  ;;  %4852 = vmatprep.subr.mxu0 %v190_v31 }
 0x101   :  { %2747 = vmatmul.mubr.f32.vlgmr.msra.gmra.mrb[0].mxu1 %v460_v22  ;;  %4847 = vmatmul.mubr.f32.vlgmr.msra.gmra.mrb[0].mxu0 %v715_v23 }
 0x102   :  { %2753 = vmatpush1.xpose.msra.mxu1 %v129_v34  ;;  %4853 = vmatpush1.xpose.msra.mxu0 %v189_v36 }
 0x103   :  { %2816 = vmatprep.mubr.f32.mxu1 %v469_v35  ;;  %2822 = vmatprep.subr.mxu1 %v132_v39 }
 0x104   :  { %4916 = vmatprep.mubr.f32.mxu0 %v724_v37  ;;  %4922 = vmatprep.subr.mxu0 %v192_v41 }
 0x109   :  { %2817 = vmatmul.mubr.f32.vlgmr.msra.gmra.mrb[0].mxu1 %v467_v32  ;;  %4917 = vmatmul.mubr.f32.vlgmr.msra.gmra.mrb[0].mxu0 %v722_v33 }
 0x10a   :  { %2823 = vmatpush1.xpose.msra.mxu1 %v131_v44  ;;  %4923 = vmatpush1.xpose.msra.mxu0 %v191_v47 }
 0x10b   :  { %2886 = vmatprep.mubr.f32.mxu1 %v485_v45  ;;  %2892 = vmatprep.subr.mxu1 %v134_v50 }
 0x10c   :  { %4986 = vmatprep.mubr.f32.mxu0 %v740_v48  ;;  %4992 = vmatprep.subr.mxu0 %v194_v51 }
 0x111   :  { %2887 = vmatmul.mubr.f32.vlgmr.msra.gmra.mrb[0].mxu1 %v477_v42  ;;  %4987 = vmatmul.mubr.f32.vlgmr.msra.gmra.mrb[0].mxu0 %v732_v43 }
 0x112   :  { %2893 = vmatpush1.xpose.msra.mxu1 %v133_v54  ;;  %4993 = vmatpush1.xpose.msra.mxu0 %v193_v56 }
 0x113   :  { %2956 = vmatprep.mubr.f32.mxu1 %v486_v55  ;;  %5056 = vmatprep.mubr.f32.mxu0 %v741_v57 }
 0x119   :  { %2957 = vmatmul.mubr.f32.vlgmr.msra.gmra.mrb[0].mxu1 %v484_v52  ;;  %5057 = vmatmul.mubr.f32.vlgmr.msra.gmra.mrb[0].mxu0 %v739_v53 }
 0x1ec   :  { %v2958_v5 = vpop.f32.mrb[0].mxu1  ;;  %v5058_v62 = vpop.f32.mrb[0].mxu0 }
 0x1ed   :  { %v5112_v61 = vadd.f32 %v5110_v58, %v2958_v5  ;;  %v2960_v63 = vpop.f32.mrb[1].mxu1  ;;  %v5060_v1 = vpop.f32.mrb[1].mxu0 }
 0x1ef   :  { %v5113_v2 = vadd.f32 %v5112_v61, %v5058_v62 }
 0x1f1   :  { %v5062_v6 = vmax.f32 %v5113_v2, 0.0 }
 0x1f3   :  { %v5068_v8 = vmul.f32 %v5067_v4, %v5062_v6  ;;  %v5077_v10 = vmul.f32 %v5076_v7, %v5062_v6 }
 0x1f5   :  { %v5070_v9 = vsel %vm5069_vm0, %v5068_v8, 0.0  ;;  %v5078_v11 = vsel %vm5069_vm0, %v5077_v10, 0.0 }
 0x1f6   :  { %5071 = vadd.xlane.f32.xlu0 %v5070_v9 }
 0x1fa   :  { %5079 = vadd.xlane.f32.xlu0 %v5078_v11 }
 0x283   :  { %v5072_v12 = vpop.xlane.xlu0 %5071 }
 0x287   :  { %v5080_v14 = vpop.xlane.xlu0 %5079 }
 0x288   :  { %v5082_v3 = vsel %vm5081_vm1, %v5072_v12, %v5080_v14 }
 0x289   :  { %v5090_v15 = vadd.f32 %v5111_v13, %v5082_v3 }
 0x28b   :  { %v5091_v16 = vmax.f32 %v5090_v15, 0.0 }
 0x28d   :  { %5093 = vst.msk [vmem:[#allocation7] sm:$0x3] %vm5092_vm2, %v5091_v16 }
 0x28e   :  { %5319 = shalt.err (!%p5316_p6)
}
 0x28f   :  { %s5320_s4 = scalar_lea.hbm %s5487_s5, 32 }
 0x290   :  { %p5321_p7 = scmp.ne.s32.totalorder %s5487_s5, %s5320_s4  ;;  %p5324_p8 = scmp.lt.u32.totalorder %s5320_s4, %s5487_s5 }
 0x292   :  { %p5326_p9 = pnand %p5324_p8, %p5321_p7 }
 0x294   :  { %5329 = shalt.err (!%p5326_p9)
}
 0x295   :  { %5103 = dma.vmem_to_hbm [thread:$0]  %s5101_s20, 32, %s5487_s5, [#allocation4]  }
 0x296   :  { %5334 = dma.done.wait [#allocation4], 32  }
 0x297   :  { %5335 = vsyncadd [#allocation4], 4294967264 }
 0x298   :  { %5107 = vsyncpa [#allocation3], 1 }
 0x299   :  { %5108 = vsyncpa [#allocation6], 1 }
 0x29a   :  { %5109 = vsyncpa [#allocation4], 1 }

</bundles_post_ra>
